<compile_context>
chip_gen: v5e
topology: v5e:2x2
jax: 0.10.0
libtpu: 0.0.40
codegen_flags: <defaults>
</compile_context>

<pallas_src>
import jax
import jax.numpy as jnp
from jax.experimental import pallas as pl
from jax.experimental.pallas import tpu as pltpu


def _round_up(x, m):
    return ((x + m - 1) // m) * m


def gated_pooling_kernel(feat_ref, wa_ref, ba_ref, wc_ref, bc_ref, out_ref):
    # feat_ref: (TB, S, C)   feature tile, channels-last, spatial flattened
    # wa_ref:   (S, C)       depthwise "alpha" conv weights (full-spatial kernel)
    # ba_ref:   (1, C)       alpha conv bias
    # wc_ref:   (C, KPAD)    classifier weight, transposed + lane-padded
    # bc_ref:   (1, KPAD)    classifier bias, lane-padded
    # out_ref:  (TB, KPAD)   logits (lane-dense store)
    feat = feat_ref[...].astype(jnp.float32)                 # (TB, S, C)
    wa = wa_ref[...]                                          # (S, C) f32

    # Depthwise full-spatial conv == per-channel weighted sum over spatial dim.
    alpha_lin = jnp.sum(feat * wa[None, :, :], axis=1) + ba_ref[...]   # (TB, C)
    alpha = jax.nn.sigmoid(alpha_lin)                                  # EUP, f32

    # Adaptive max / avg pooling to (1, 1) == reduce over the spatial axis.
    max_f = jnp.max(feat, axis=1)                                      # (TB, C)
    avg_f = jnp.mean(feat, axis=1)                                     # (TB, C)

    pooled = max_f * alpha + avg_f * (1.0 - alpha)                     # (TB, C)

    # Classifier: logits = pooled @ W^T + b (W stored pre-transposed, lane-padded).
    logits = jnp.dot(pooled, wc_ref[...],
                     preferred_element_type=jnp.float32) + bc_ref[...]  # (TB, KPAD)
    out_ref[...] = logits.astype(out_ref.dtype)


def gated_pooling_head(feat_bsc, w_alpha, b_alpha, w_cls, b_cls, *, batch_tile=256):
    """Gated-pooling head on a channels-last feature map.

    feat_bsc: (B, S, C) feature map, channels-last, spatial flattened (f32 or bf16).
    w_alpha:  (C, H, W) depthwise conv weight (squeezed from (C, 1, H, W)), H*W == S.
    b_alpha:  (C,)
    w_cls:    (K, C)    torch Linear weight.
    b_cls:    (K,)
    returns logits (B, K) f32.
    """
    B, S, C = feat_bsc.shape
    K = w_cls.shape[0]
    assert w_alpha.shape[0] == C and w_alpha.reshape(C, -1).shape[1] == S, (
        "depthwise conv kernel must cover the full feature map (k == H == W)")

    # Lane-dense output: pad K up to a multiple of 128 lanes.
    KPAD = _round_up(K, 128)

    # Batch tile: multiple of 8 sublanes; cap for VMEM (2-8 MiB/buffer at real S,C).
    TB = min(batch_tile, _round_up(B, 8))
    B_pad = _round_up(B, TB)
    if B_pad != B:
        feat_bsc = jnp.pad(feat_bsc, ((0, B_pad - B), (0, 0), (0, 0)))

    # Small weights: f32, VMEM-resident across all grid steps.
    wa = jnp.transpose(w_alpha.reshape(C, S), (1, 0)).astype(jnp.float32)   # (S, C)
    ba = b_alpha.reshape(1, C).astype(jnp.float32)                          # (1, C)
    wc = jnp.pad(jnp.transpose(w_cls, (1, 0)).astype(jnp.float32),
                 ((0, 0), (0, KPAD - K)))                                   # (C, KPAD)
    bc = jnp.pad(b_cls.reshape(1, K).astype(jnp.float32),
                 ((0, 0), (0, KPAD - K)))                                   # (1, KPAD)

    feat_bytes = jnp.dtype(feat_bsc.dtype).itemsize
    weight_bytes = (S * C + C + C * KPAD + KPAD) * 4
    per_step_bytes = (2 * TB * S * C * feat_bytes      # double-buffered feature tile
                      + 2 * TB * KPAD * 4              # double-buffered output tile
                      + 2 * weight_bytes)              # resident weights (buffered)
    vmem_limit = int(min(64 << 20, max(32 << 20, 2 * per_step_bytes)))

    cost = pl.CostEstimate(
        flops=B_pad * (4 * S * C + 2 * C * KPAD + 4 * C),
        transcendentals=B_pad * C,
        bytes_accessed=(B_pad * S * C * feat_bytes + weight_bytes + B_pad * KPAD * 4),
    )

    grid = (B_pad // TB,)
    out = pl.pallas_call(
        gated_pooling_kernel,
        out_shape=jax.ShapeDtypeStruct((B_pad, KPAD), jnp.float32),
        grid_spec=pltpu.PrefetchScalarGridSpec(
            num_scalar_prefetch=0,
            grid=grid,
            in_specs=[
                pl.BlockSpec((TB, S, C), lambda b: (b, 0, 0)),   # streamed feature
                pl.BlockSpec((S, C), lambda b: (0, 0)),          # resident weights
                pl.BlockSpec((1, C), lambda b: (0, 0)),
                pl.BlockSpec((C, KPAD), lambda b: (0, 0)),
                pl.BlockSpec((1, KPAD), lambda b: (0, 0)),
            ],
            out_specs=pl.BlockSpec((TB, KPAD), lambda b: (b, 0)),
        ),
        compiler_params=pltpu.CompilerParams(
            dimension_semantics=("parallel",),
            vmem_limit_bytes=vmem_limit,
        ),
        cost_estimate=cost,
    )(feat_bsc, wa, ba, wc, bc)
    return out[:B, :K]


def gated_pooling_head_nchw(feature_nchw, w_alpha, b_alpha, w_cls, b_cls, **kw):
    """Convenience wrapper for PyTorch-style NCHW feature maps."""
    B, C, H, W = feature_nchw.shape
    assert w_alpha.shape[-2:] == (H, W), (
        "alpha conv kernel size must equal the feature-map spatial size")
    # TODO(synk): in production the backbone should emit channels-last directly;
    # this standalone transpose re-reads/writes the full feature map in HBM once.
    feat = jnp.transpose(feature_nchw.reshape(B, C, H * W), (0, 2, 1))  # (B, S, C)
    return gated_pooling_head(feat, w_alpha, b_alpha, w_cls, b_cls, **kw)


def _reference(feature_nchw, w_alpha, b_alpha, w_cls, b_cls):
    """Plain-JAX reference mirroring the PyTorch forward."""
    B, C, H, W = feature_nchw.shape
    f = feature_nchw.astype(jnp.float32)
    alpha_lin = jnp.einsum("bchw,chw->bc", f, w_alpha) + b_alpha
    alpha = jax.nn.sigmoid(alpha_lin)
    max_f = jnp.max(f.reshape(B, C, -1), axis=-1)
    avg_f = jnp.mean(f.reshape(B, C, -1), axis=-1)
    pooled = max_f * alpha + avg_f * (1.0 - alpha)
    return pooled @ w_cls.T + b_cls


if __name__ == "__main__":
    # Small, deterministic shapes: image_size=128 -> feature map 4x4,
    # num_features (channels) = 128, num_classes = 10, batch = 2.
    B, C, Hf, Wf, K = 2, 128, 4, 4, 10

    key = jax.random.PRNGKey(0)
    k_feat, k_wa, k_ba, k_wc, k_bc = jax.random.split(key, 5)

    feature = jax.random.normal(k_feat, (B, C, Hf, Wf), dtype=jnp.float32)
    # alpha: nn.Conv2d(C, C, kernel=Hf, groups=C, bias=True) -> weight (C,1,Hf,Wf), bias (C,)
    w_alpha = 0.1 * jax.random.normal(k_wa, (C, Hf, Wf), dtype=jnp.float32)
    b_alpha = 0.1 * jax.random.normal(k_ba, (C,), dtype=jnp.float32)
    # classifier: nn.Linear(C, K)
    w_cls = 0.1 * jax.random.normal(k_wc, (K, C), dtype=jnp.float32)
    b_cls = 0.1 * jax.random.normal(k_bc, (K,), dtype=jnp.float32)

    # f32 feature path (exact check vs reference).
    logits = gated_pooling_head_nchw(feature, w_alpha, b_alpha, w_cls, b_cls)
    logits = jax.block_until_ready(logits)
    expected = _reference(feature, w_alpha, b_alpha, w_cls, b_cls)
    assert logits.shape == (B, K)
    assert jnp.allclose(logits, expected, atol=1e-4, rtol=1e-4), "f32 mismatch vs reference"

    # bf16 feature path (halves feature-map HBM traffic; looser tolerance).
    feature_bf16 = feature.astype(jnp.bfloat16)
    logits_bf16 = gated_pooling_head_nchw(feature_bf16, w_alpha, b_alpha, w_cls, b_cls)
    logits_bf16 = jax.block_until_ready(logits_bf16)
    expected_bf16 = _reference(feature_bf16.astype(jnp.float32).reshape(B, C, Hf, Wf),
                               w_alpha, b_alpha, w_cls, b_cls)
    assert jnp.allclose(logits_bf16, expected_bf16, atol=5e-2, rtol=5e-2), \
        "bf16 mismatch vs reference"

    print("KERNEL_OK")
</pallas_src>

<mosaic_0001>
module attributes {stable_mosaic.version = 11 : i64} {
  func.func @gated_pooling_kernel(%arg0: i32, %arg1: memref<8x16x128xf32, #tpu.memory_space<vmem>>, %arg2: memref<16x128xf32, #tpu.memory_space<vmem>>, %arg3: memref<1x128xf32, #tpu.memory_space<vmem>>, %arg4: memref<128x128xf32, #tpu.memory_space<vmem>>, %arg5: memref<1x128xf32, #tpu.memory_space<vmem>>, %arg6: memref<8x128xf32, #tpu.memory_space<vmem>>) attributes {dimension_semantics = [#tpu.dimension_semantics<parallel>], iteration_bounds = array<i64: 1>, scalar_prefetch = 0 : i64, scratch_operands = 0 : i64, tpu.core_type = #tpu.core_type<tc>, window_params = [{transform_indices = @transform_0, window_bounds = array<i64: 8, 16, 128>}, {pipeline_mode = #tpu.pipeline_mode<synchronous>, transform_indices = @transform_1, window_bounds = array<i64: 16, 128>}, {pipeline_mode = #tpu.pipeline_mode<synchronous>, transform_indices = @transform_2, window_bounds = array<i64: 1, 128>}, {pipeline_mode = #tpu.pipeline_mode<synchronous>, transform_indices = @transform_3, window_bounds = array<i64: 128, 128>}, {pipeline_mode = #tpu.pipeline_mode<synchronous>, transform_indices = @transform_4, window_bounds = array<i64: 1, 128>}, {transform_indices = @transform_5, window_bounds = array<i64: 8, 128>}]} {
    %c0 = arith.constant 0 : index
    %c0_0 = arith.constant 0 : index
    %c0_1 = arith.constant 0 : index
    %0 = vector.load %arg1[%c0, %c0_0, %c0_1] : memref<8x16x128xf32, #tpu.memory_space<vmem>>, vector<8x16x128xf32>
    %c0_2 = arith.constant 0 : index
    %c0_3 = arith.constant 0 : index
    %1 = vector.load %arg2[%c0_2, %c0_3] : memref<16x128xf32, #tpu.memory_space<vmem>>, vector<16x128xf32>
    %2 = vector.shape_cast %1 : vector<16x128xf32> to vector<1x16x128xf32>
    %3 = vector.broadcast %2 : vector<1x16x128xf32> to vector<8x16x128xf32>
    %4 = arith.mulf %0, %3 : vector<8x16x128xf32>
    %cst = arith.constant dense<0.000000e+00> : vector<8x128xf32>
    %5 = vector.multi_reduction <add>, %4, %cst [1] : vector<8x16x128xf32> to vector<8x128xf32>
    %c0_4 = arith.constant 0 : index
    %c0_5 = arith.constant 0 : index
    %6 = vector.load %arg3[%c0_4, %c0_5] : memref<1x128xf32, #tpu.memory_space<vmem>>, vector<1x128xf32>
    %7 = vector.broadcast %6 : vector<1x128xf32> to vector<8x128xf32>
    %8 = arith.addf %5, %7 : vector<8x128xf32>
    %9 = arith.negf %8 : vector<8x128xf32>
    %10 = math.exp %9 : vector<8x128xf32>
    %cst_6 = arith.constant 1.000000e+00 : f32
    %11 = vector.broadcast %cst_6 : f32 to vector<8x128xf32>
    %12 = arith.addf %11, %10 : vector<8x128xf32>
    %13 = arith.divf %11, %12 : vector<8x128xf32>
    %cst_7 = arith.constant dense<0xFF800000> : vector<8x128xf32>
    %14 = vector.multi_reduction <maximumf>, %0, %cst_7 [1] : vector<8x16x128xf32> to vector<8x128xf32>
    %cst_8 = arith.constant dense<0.000000e+00> : vector<8x128xf32>
    %15 = vector.multi_reduction <add>, %0, %cst_8 [1] : vector<8x16x128xf32> to vector<8x128xf32>
    %cst_9 = arith.constant 1.600000e+01 : f32
    %16 = vector.broadcast %cst_9 : f32 to vector<8x128xf32>
    %17 = arith.divf %15, %16 : vector<8x128xf32>
    %18 = arith.mulf %14, %13 : vector<8x128xf32>
    %cst_10 = arith.constant 1.000000e+00 : f32
    %19 = vector.broadcast %cst_10 : f32 to vector<8x128xf32>
    %20 = arith.subf %19, %13 : vector<8x128xf32>
    %21 = arith.mulf %17, %20 : vector<8x128xf32>
    %22 = arith.addf %18, %21 : vector<8x128xf32>
    %c0_11 = arith.constant 0 : index
    %c0_12 = arith.constant 0 : index
    %23 = vector.load %arg4[%c0_11, %c0_12] : memref<128x128xf32, #tpu.memory_space<vmem>>, vector<128x128xf32>
    %cst_13 = arith.constant dense<0.000000e+00> : vector<8x128xf32>
    %24 = tpu.matmul %22, %23, %cst_13 {dimension_numbers = #tpu.dot_dimension_numbers<[1], [0], [0], [1], [0, 0, 1, 1], [], []>} : vector<8x128xf32>, vector<128x128xf32>, vector<8x128xf32> -> vector<8x128xf32>
    %c0_14 = arith.constant 0 : index
    %c0_15 = arith.constant 0 : index
    %25 = vector.load %arg5[%c0_14, %c0_15] : memref<1x128xf32, #tpu.memory_space<vmem>>, vector<1x128xf32>
    %26 = vector.broadcast %25 : vector<1x128xf32> to vector<8x128xf32>
    %27 = arith.addf %24, %26 : vector<8x128xf32>
    %c0_16 = arith.constant 0 : index
    %c0_17 = arith.constant 0 : index
    %28 = vector.load %arg6[%c0_16, %c0_17] : memref<8x128xf32, #tpu.memory_space<vmem>>, vector<8x128xf32>
    tpu.vector_store %arg6[%c0_16, %c0_17], %27 {strides = array<i32>} : memref<8x128xf32, #tpu.memory_space<vmem>>, vector<8x128xf32>,
    return
  }
  func.func @transform_0(%arg0: i32) -> (i32, i32, i32) {
    %c0_i32 = arith.constant 0 : i32
    %c0_i32_0 = arith.constant 0 : i32
    %c0_i32_1 = arith.constant 0 : i32
    return %arg0, %c0_i32, %c0_i32_0 : i32, i32, i32
  }
  func.func @transform_1(%arg0: i32) -> (i32, i32) {
    %c0_i32 = arith.constant 0 : i32
    %c0_i32_0 = arith.constant 0 : i32
    %c0_i32_1 = arith.constant 0 : i32
    return %c0_i32, %c0_i32_0 : i32, i32
  }
  func.func @transform_2(%arg0: i32) -> (i32, i32) {
    %c0_i32 = arith.constant 0 : i32
    %c0_i32_0 = arith.constant 0 : i32
    %c0_i32_1 = arith.constant 0 : i32
    return %c0_i32, %c0_i32_0 : i32, i32
  }
  func.func @transform_3(%arg0: i32) -> (i32, i32) {
    %c0_i32 = arith.constant 0 : i32
    %c0_i32_0 = arith.constant 0 : i32
    %c0_i32_1 = arith.constant 0 : i32
    return %c0_i32, %c0_i32_0 : i32, i32
  }
  func.func @transform_4(%arg0: i32) -> (i32, i32) {
    %c0_i32 = arith.constant 0 : i32
    %c0_i32_0 = arith.constant 0 : i32
    %c0_i32_1 = arith.constant 0 : i32
    return %c0_i32, %c0_i32_0 : i32, i32
  }
  func.func @transform_5(%arg0: i32) -> (i32, i32) {
    %c0_i32 = arith.constant 0 : i32
    %c0_i32_0 = arith.constant 0 : i32
    return %arg0, %c0_i32 : i32, i32
  }
}

</mosaic_0001>

<bundles_post_ra>
// kernel: tpu_custom_call.1
= control target key start
LH: loop header
LB: loop body
LE: loop exit
PB: predicated region body
PF: predicated region fallthrough
CT: control target
= control target key end

     0   :  { %10 = vsyncpa [#allocation3], 0  ;;  %s1163_s0 = inlined_call_operand.hbm [shape: f32[8,16,128], index: 0, kind: input, shape index: {}]   ;;  %s1164_s1 = inlined_call_operand.hbm [shape: f32[16,128], index: 1, kind: input, shape index: {}]   ;;  %s1165_s2 = inlined_call_operand.vmem [shape: f32[1,128], index: 2, kind: input, shape index: {}]   ;;  %s1166_s3 = inlined_call_operand.hbm [shape: f32[128,128], index: 3, kind: input, shape index: {}]   ;;  %s1167_s4 = inlined_call_operand.vmem [shape: f32[1,128], index: 4, kind: input, shape index: {}]   ;;  %s1168_s5 = inlined_call_operand.hbm [shape: f32[8,128], index: 5, kind: output, shape index: {}]  }
   0x1   :  { %11 = vsyncpa [#allocation6], 0 }
   0x2   :  { %12 = vsyncpa [#allocation4], 0  ;;  %s30_s20 = sshll.u32 %s1164_s1, 4  ;;  %s723_s21 = smov [#allocation5]   ;;  %s31_s20 = int_to_ptr.hbm [resolvable:$true] %s30_s20 }
   0x3   :  { %s32_s22 = sshll.u32 %s723_s21, 4  ;;  %s17_s25 = sshll.u32 %s1163_s0, 4  ;;  %s33_s22 = int_to_ptr.vmem [resolvable:$true] %s32_s22  ;;  %s18_s25 = int_to_ptr.hbm [resolvable:$true] %s17_s25 }
   0x4   :  { %s724_s26 = smov 128   ;;  %s725_s27 = smov 8  }
   0x5   :  { %38 = dma.hbm_to_vmem [thread:$0]  %s31_s20, 256, %s33_s22, [#allocation6], %s724_s26, %s724_s26, %s725_s27  }
   0x6   :  { %s726_s28 = smov [#allocation2]   ;;  %s45_s7 = sshll.u32 %s1166_s3, 4  ;;  %s46_s7 = int_to_ptr.hbm [resolvable:$true] %s45_s7 }
   0x7   :  { %s19_s29 = sshll.u32 %s726_s28, 4  ;;  %s727_s1 = smov [#allocation7]   ;;  %s20_s29 = int_to_ptr.vmem [resolvable:$true] %s19_s29 }
   0x8   :  { %25 = dma.hbm_to_vmem [thread:$0]  %s18_s25, 2048, %s20_s29, [#allocation3], %s724_s26, %s724_s26, %s725_s27  }
   0x9   :  { %s47_s8 = sshll.u32 %s727_s1, 4  ;;  %s48_s8 = int_to_ptr.vmem [resolvable:$true] %s47_s8 }
   0xa   :  { %53 = dma.hbm_to_vmem [thread:$0]  %s46_s7, 2048, %s48_s8, [#allocation6], %s724_s26, %s724_s26, %s725_s27  }
   0xb   :  { %717 = dma.done.wait [#allocation3], 2048  }
   0xc   :  { %718 = vsyncadd [#allocation3], 4294965248 }
   0xd   :  { %719 = dma.done.wait [#allocation6], 2304  }
   0xe   :  { %720 = vsyncadd [#allocation6], 4294964992  ;;  %v496_v0 = vld [vmem:[#allocation7 + $0x78] sm:$0xff]  ;;  %v495_v1 = vld [vmem:[#allocation7 + $0x70] sm:$0xff]  ;;  %s729_s10 = smov [#allocation8]   ;;  %s559_s14 = sshll.u32 %s1168_s5, 4  ;;  %s560_s14 = int_to_ptr.hbm [resolvable:$true] %s559_s14 }
   0xf   :  { %531 = vmatpush.msra.mxu0 %v496_v0  ;;  %v494_v2 = vld [vmem:[#allocation7 + $0x68] sm:$0xff]  ;;  %v493_v3 = vld [vmem:[#allocation7 + $0x60] sm:$0xff]  ;;  %v492_v4 = vld [vmem:[#allocation7 + $0x58] sm:$0xff]  ;;  %s557_s11 = sshll.u32 %s729_s10, 4  ;;  %s558_s11 = int_to_ptr.vmem [resolvable:$true] %s557_s11 }
  0x10   :  { %v491_v5 = vld [vmem:[#allocation7 + $0x50] sm:$0xff]  ;;  %v771_v7 = vld [vmem:[#allocation2 + $0x10] sm:$0xff]  ;;  %v773_v8 = vld [vmem:[#allocation2 + $0x8] sm:$0xff] }
  0x11   :  { %532 = vmatpush.msra.mxu0 %v495_v1  ;;  %v769_v6 = vld [vmem:[#allocation2] sm:$0xff]  ;;  %v775_v9 = vld [vmem:[#allocation2 + $0x18] sm:$0xff]  ;;  %v779_v11 = vld [vmem:[#allocation2 + $0x28] sm:$0xff] }
  0x12   :  { %v777_v10 = vld [vmem:[#allocation2 + $0x20] sm:$0xff]  ;;  %v781_v12 = vld [vmem:[#allocation2 + $0x30] sm:$0xff]  ;;  %v490_v13 = vld [vmem:[#allocation7 + $0x48] sm:$0xff] }
  0x13   :  { %533 = vmatpush.msra.mxu0 %v494_v2  ;;  %v783_v14 = vld [vmem:[#allocation2 + $0x38] sm:$0xff]  ;;  %v785_v15 = vld [vmem:[#allocation2 + $0x40] sm:$0xff]  ;;  %v787_v16 = vld [vmem:[#allocation2 + $0x48] sm:$0xff] }
  0x14   :  { %v789_v17 = vld [vmem:[#allocation2 + $0x50] sm:$0xff]  ;;  %v791_v18 = vld [vmem:[#allocation2 + $0x58] sm:$0xff]  ;;  %v793_v19 = vld [vmem:[#allocation2 + $0x60] sm:$0xff] }
  0x15   :  { %534 = vmatpush.msra.mxu0 %v493_v3  ;;  %v795_v20 = vld [vmem:[#allocation2 + $0x68] sm:$0xff]  ;;  %v797_v21 = vld [vmem:[#allocation2 + $0x70] sm:$0xff]  ;;  %v84_v22 = vld [vmem:[#allocation5] sm:$0xff] }
  0x16   :  { %v799_v23 = vld [vmem:[#allocation2 + $0x78] sm:$0xff]  ;;  %v85_v24 = vld [vmem:[#allocation5 + $0x8] sm:$0xff]  ;;  %v86_v25 = vmul.f32 %v84_v22, %v769_v6  ;;  %v88_v26 = vmul.f32 %v84_v22, %v771_v7  ;;  %v90_v27 = vmul.f32 %v84_v22, %v777_v10  ;;  %v92_v28 = vmul.f32 %v84_v22, %v781_v12  ;;  %v489_v29 = vld [vmem:[#allocation7 + $0x40] sm:$0xff] }
  0x17   :  { %535 = vmatpush.msra.mxu0 %v492_v4  ;;  %v87_v30 = vmul.f32 %v85_v24, %v773_v8  ;;  %v89_v31 = vmul.f32 %v85_v24, %v775_v9  ;;  %v91_v32 = vmul.f32 %v85_v24, %v779_v11  ;;  %v93_v33 = vmul.f32 %v85_v24, %v783_v14  ;;  %v488_v38 = vld [vmem:[#allocation7 + $0x38] sm:$0xff]  ;;  %v487_v47 = vld [vmem:[#allocation7 + $0x30] sm:$0xff]  ;;  %v486_v56 = vld [vmem:[#allocation7 + $0x28] sm:$0xff] }
  0x18   :  { %v94_v34 = vmul.f32 %v84_v22, %v785_v15  ;;  %v95_v35 = vmul.f32 %v85_v24, %v787_v16  ;;  %v96_v36 = vmul.f32 %v84_v22, %v789_v17  ;;  %v97_v37 = vmul.f32 %v85_v24, %v791_v18  ;;  %v485_v1 = vld [vmem:[#allocation7 + $0x20] sm:$0xff] }
  0x19   :  { %536 = vmatpush.msra.mxu0 %v491_v5  ;;  %v98_v39 = vmul.f32 %v84_v22, %v793_v19  ;;  %v99_v40 = vmul.f32 %v85_v24, %v795_v20  ;;  %v100_v41 = vmul.f32 %v84_v22, %v797_v21  ;;  %v101_v42 = vmul.f32 %v85_v24, %v799_v23 }
  0x1a   :  { %v102_v43 = vadd.f32 %v87_v30, %v86_v25  ;;  %v109_v44 = vadd.f32 %v89_v31, %v88_v26  ;;  %v116_v45 = vadd.f32 %v91_v32, %v90_v27  ;;  %v123_v46 = vadd.f32 %v93_v33, %v92_v28  ;;  %v484_v26 = vld [vmem:[#allocation7 + $0x18] sm:$0xff] }
  0x1b   :  { %537 = vmatpush.msra.mxu0 %v490_v13  ;;  %v130_v48 = vadd.f32 %v95_v35, %v94_v34  ;;  %v137_v49 = vadd.f32 %v97_v37, %v96_v36  ;;  %v144_v50 = vadd.f32 %v99_v40, %v98_v39  ;;  %v151_v51 = vadd.f32 %v101_v42, %v100_v41  ;;  %v483_v34 = vld [vmem:[#allocation7 + $0x10] sm:$0xff] }
  0x1c   :  { %v103_v52 = vrot.slane %v102_v43, 4  ;;  %v110_v53 = vrot.slane %v109_v44, 4  ;;  %v117_v54 = vrot.slane %v116_v45, 4  ;;  %v124_v55 = vrot.slane %v123_v46, 4  ;;  %v585_v42 = vld [vmem:[%s1165_s2] ss:$0 sm:$0xff] }
  0x1d   :  { %538 = vmatpush.msra.mxu0 %v489_v29  ;;  %v131_v57 = vrot.slane %v130_v48, 4  ;;  %v138_v58 = vrot.slane %v137_v49, 4  ;;  %v145_v59 = vrot.slane %v144_v50, 4  ;;  %v152_v60 = vrot.slane %v151_v51, 4 }
  0x1e   :  { %v104_v61 = vadd.f32 %v103_v52, %v102_v43  ;;  %v111_v62 = vadd.f32 %v110_v53, %v109_v44  ;;  %v118_v63 = vadd.f32 %v117_v54, %v116_v45  ;;  %v125_v0 = vadd.f32 %v124_v55, %v123_v46  ;;  %v482_v43 = vld [vmem:[#allocation7 + $0x8] sm:$0xff] }
  0x1f   :  { %539 = vmatpush.msra.mxu0 %v488_v38  ;;  %v132_v2 = vadd.f32 %v131_v57, %v130_v48  ;;  %v139_v3 = vadd.f32 %v138_v58, %v137_v49  ;;  %v146_v4 = vadd.f32 %v145_v59, %v144_v50  ;;  %v153_v5 = vadd.f32 %v152_v60, %v151_v51  ;;  %v481_v51 = vld [vmem:[#allocation7] sm:$0xff] }
  0x20   :  { %v105_v13 = vrot.slane %v104_v61, 2  ;;  %v112_v22 = vrot.slane %v111_v62, 2  ;;  %v119_v24 = vrot.slane %v118_v63, 2  ;;  %v126_v25 = vrot.slane %v125_v0, 2 }
  0x21   :  { %540 = vmatpush.msra.mxu0 %v487_v47  ;;  %v133_v27 = vrot.slane %v132_v2, 2  ;;  %v140_v28 = vrot.slane %v139_v3, 2  ;;  %v147_v29 = vrot.slane %v146_v4, 2  ;;  %v154_v37 = vrot.slane %v153_v5, 2 }
  0x22   :  { %v106_v30 = vadd.f32 %v105_v13, %v104_v61  ;;  %v113_v31 = vadd.f32 %v112_v22, %v111_v62  ;;  %v120_v32 = vadd.f32 %v119_v24, %v118_v63  ;;  %v127_v33 = vadd.f32 %v126_v25, %v125_v0 }
  0x23   :  { %541 = vmatpush.msra.mxu0 %v486_v56  ;;  %v134_v35 = vadd.f32 %v133_v27, %v132_v2  ;;  %v141_v36 = vadd.f32 %v140_v28, %v139_v3  ;;  %v148_v46 = vadd.f32 %v147_v29, %v146_v4  ;;  %v155_v54 = vadd.f32 %v154_v37, %v153_v5 }
  0x24   :  { %v107_v38 = vrot.slane %v106_v30, 1  ;;  %v114_v39 = vrot.slane %v113_v31, 1  ;;  %v121_v40 = vrot.slane %v120_v32, 1  ;;  %v128_v41 = vrot.slane %v127_v33, 1 }
  0x25   :  { %542 = vmatpush.msra.mxu0 %v485_v1  ;;  %v135_v44 = vrot.slane %v134_v35, 1  ;;  %v142_v45 = vrot.slane %v141_v36, 1  ;;  %v149_v59 = vrot.slane %v148_v46, 1  ;;  %v156_v2 = vrot.slane %v155_v54, 1 }
  0x26   :  { %v108_v47 = vadd.f32 %v107_v38, %v106_v30  ;;  %v115_v48 = vadd.f32 %v114_v39, %v113_v31  ;;  %v122_v49 = vadd.f32 %v121_v40, %v120_v32  ;;  %v129_v50 = vadd.f32 %v128_v41, %v127_v33 }
  0x27   :  { %543 = vmatpush.msra.mxu0 %v484_v26  ;;  %v136_v52 = vadd.f32 %v135_v44, %v134_v35  ;;  %v143_v53 = vadd.f32 %v142_v45, %v141_v36  ;;  %v322_v4 = vmax.f32 %v769_v6, %v773_v8  ;;  %v150_v5 = vadd.f32 %v149_v59, %v148_v46 }
  0x28   :  { %v162_v55 = vadd.f32 %v585_v42, %v108_v47  ;;  %v163_v56 = vadd.f32 %v585_v42, %v115_v48  ;;  %v164_v57 = vadd.f32 %v585_v42, %v122_v49  ;;  %v165_v58 = vadd.f32 %v585_v42, %v129_v50 }
  0x29   :  { %544 = vmatpush.msra.mxu0 %v483_v34  ;;  %v166_v60 = vadd.f32 %v585_v42, %v136_v52  ;;  %v167_v61 = vadd.f32 %v585_v42, %v143_v53  ;;  %v329_v22 = vmax.f32 %v771_v7, %v775_v9  ;;  %v157_v24 = vadd.f32 %v156_v2, %v155_v54 }
  0x2a   :  { %v570_v62 = vmul.f32 -1.442695, %v162_v55  ;;  %v571_v63 = vmul.f32 -1.442695, %v163_v56  ;;  %v572_v0 = vmul.f32 -1.442695, %v164_v57  ;;  %v168_v26 = vadd.f32 %v585_v42, %v150_v5 }
  0x2b   :  { %545 = vmatpush.msra.mxu0 %v482_v43  ;;  %v573_v1 = vmul.f32 -1.442695, %v165_v58  ;;  %v574_v3 = vmul.f32 -1.442695, %v166_v60  ;;  %v575_v13 = vmul.f32 -1.442695, %v167_v61  ;;  %v336_v31 = vmax.f32 %v777_v10, %v779_v11 }
  0x2c   :  { %587 = vpow2.f32 %v570_v62  ;;  %v323_v25 = vrot.slane %v322_v4, 4  ;;  %v330_v30 = vrot.slane %v329_v22, 4  ;;  %v169_v33 = vadd.f32 %v585_v42, %v157_v24 }
  0x2d   :  { %546 = vmatpush.msra.mxu0 %v481_v51  ;;  %589 = vpow2.f32 %v571_v63  ;;  %v576_v37 = vmul.f32 -1.442695, %v168_v26  ;;  %v343_v41 = vmax.f32 %v781_v12, %v783_v14  ;;  %v350_v42 = vmax.f32 %v785_v15, %v787_v16 }
  0x2e   :  { %591 = vpow2.f32 %v572_v0  ;;  %v324_v35 = vmax.f32 %v322_v4, %v323_v25  ;;  %v331_v45 = vmax.f32 %v329_v22, %v330_v30  ;;  %v337_v46 = vrot.slane %v336_v31, 4 }
  0x2f   :  { %593 = vpow2.f32 %v573_v1  ;;  %v357_v47 = vmax.f32 %v789_v17, %v791_v18  ;;  %v577_v48 = vmul.f32 -1.442695, %v169_v33  ;;  %v344_v51 = vrot.slane %v343_v41, 4 }
  0x30   :  { %595 = vpow2.f32 %v574_v3  ;;  %v325_v49 = vrot.slane %v324_v35, 2  ;;  %v351_v52 = vrot.slane %v350_v42, 4  ;;  %v332_v54 = vrot.slane %v331_v45, 2 }
  0x31   :  { %597 = vpow2.f32 %v575_v13  ;;  %v851_v55 = vmax.f32 %v336_v31, %v337_v46  ;;  %v358_v56 = vrot.slane %v357_v47, 4  ;;  %v864_v62 = vmax.f32 %v343_v41, %v344_v51 }
  0x32   :  { %v588_v27 = vpop.eup %587  ;;  %v855_v58 = vmax.f32 %v324_v35, %v325_v49  ;;  %v866_v63 = vmax.f32 %v350_v42, %v351_v52  ;;  %v870_v2 = vmax.f32 %v331_v45, %v332_v54  ;;  %v364_v49 = vmax.f32 %v793_v19, %v795_v20 }
  0x33   :  { %v590_v28 = vpop.eup %589  ;;  %v824_v29 = vadd.f32 1.0, %v588_v27  ;;  %v339_v3 = vrot.slane %v851_v55, 2  ;;  %v873_v4 = vmax.f32 %v357_v47, %v358_v56  ;;  %v346_v35 = vrot.slane %v864_v62, 2 }
  0x34   :  { %v592_v32 = vpop.eup %591  ;;  %v828_v34 = vadd.f32 1.0, %v590_v28  ;;  %v327_v25 = vrot.slane %v855_v58, 1 }
  0x35   :  { %v594_v36 = vpop.eup %593  ;;  %v830_v38 = vadd.f32 1.0, %v592_v32  ;;  %599 = vrcp.f32 %v824_v29  ;;  %v211_v13 = vand.u32 2147483647, %v824_v29  ;;  %v213_v22 = vand.u32 2147483648, %v824_v29 }
  0x36   :  { %v596_v39 = vpop.eup %595  ;;  %v833_v40 = vadd.f32 1.0, %v594_v36  ;;  %601 = vrcp.f32 %v828_v34  ;;  %v226_v24 = vand.u32 2147483647, %v828_v34  ;;  %v228_v30 = vand.u32 2147483648, %v828_v34 }
  0x37   :  { %v598_v43 = vpop.eup %597  ;;  %v840_v44 = vadd.f32 1.0, %v596_v39  ;;  %603 = vrcp.f32 %v830_v38  ;;  %vm207_vm0 = vweird.f32 %v824_v29  ;;  %v353_v36 = vrot.slane %v866_v63, 2 }
  0x38   :  { %605 = vpow2.f32 %v576_v37  ;;  %v845_v50 = vadd.f32 1.0, %v598_v43  ;;  %vm222_vm1 = vweird.f32 %v828_v34  ;;  %v241_v39 = vand.u32 2147483647, %v830_v38 }
  0x39   :  { %607 = vrcp.f32 %v833_v40  ;;  %v214_v45 = vor.u32 1.1754944e-38, %v213_v22  ;;  %vm237_vm2 = vweird.f32 %v830_v38  ;;  %vm901_vm3 = vcmp.eq.f32.partialorder %v211_v13, 8.507059e+37 }
  0x3a   :  { %609 = vrcp.f32 %v840_v44  ;;  %vm906_vm4 = vcmp.eq.f32.partialorder %v226_v24, 8.507059e+37  ;;  %v229_v54 = vor.u32 1.1754944e-38, %v228_v30  ;;  %v243_v56 = vand.u32 2147483648, %v830_v38 }
  0x3b   :  { %v848_v53 = vpop.eup %599  ;;  %611 = vpow2.f32 %v577_v48  ;;  %vm252_vm6 = vweird.f32 %v833_v40  ;;  %vm917_vm8 = vcmp.eq.f32.partialorder %v241_v39, 8.507059e+37  ;;  %v256_v13 = vand.u32 2147483647, %v833_v40 }
  0x3c   :  { %v853_v57 = vpop.eup %601  ;;  %v203_v59 = vmul.f32 %v848_v53, %v824_v29  ;;  %613 = vrcp.f32 %v845_v50  ;;  %vm208_vm5 = vweird.f32 %v848_v53  ;;  %v258_v22 = vand.u32 2147483648, %v833_v40 }
  0x3d   :  { %v218_v60 = vmul.f32 %v853_v57, %v828_v34  ;;  %v861_v61 = vpop.eup %603  ;;  %vm223_vm7 = vweird.f32 %v853_v57  ;;  %vm929_vm10 = vmor %vm207_vm0, %vm208_vm5  ;;  %vm267_vm13 = vweird.f32 %v840_v44  ;;  %v271_v29 = vand.u32 2147483647, %v840_v44 }
  0x3e   :  { %v606_v0 = vpop.eup %605  ;;  %v233_v1 = vmul.f32 %v861_v61, %v830_v38  ;;  %v204_v27 = vsub.f32 1.0, %v203_v59  ;;  %vm238_vm9 = vweird.f32 %v861_v61  ;;  %vm937_vm12 = vmor %vm222_vm1, %vm223_vm7  ;;  %v273_v39 = vand.u32 2147483648, %v840_v44 }
  0x3f   :  { %v875_v5 = vpop.eup %607  ;;  %v219_v28 = vsub.f32 1.0, %v218_v60  ;;  %v895_v43 = vadd.f32 1.0, %v606_v0  ;;  %vm950_vm15 = vmor %vm237_vm2, %vm238_vm9  ;;  %vm963_vm1 = vcmp.eq.f32.partialorder %v256_v13, 8.507059e+37  ;;  %v259_v13 = vor.u32 1.1754944e-38, %v258_v22 }
  0x40   :  { %v881_v26 = vpop.eup %609  ;;  %v248_v31 = vmul.f32 %v875_v5, %v833_v40  ;;  %v234_v37 = vsub.f32 1.0, %v233_v1  ;;  %v205_v48 = vmul.f32 %v848_v53, %v204_v27  ;;  %vm253_vm11 = vweird.f32 %v875_v5 }
  0x41   :  { %v612_v32 = vpop.eup %611  ;;  %v263_v33 = vmul.f32 %v881_v26, %v840_v44  ;;  %v220_v51 = vmul.f32 %v853_v57, %v219_v28  ;;  %vm268_vm14 = vweird.f32 %v881_v26  ;;  %615 = vrcp.f32 %v895_v43  ;;  %vm959_vm0 = vmor %vm252_vm6, %vm253_vm11 }
  0x42   :  { %v249_v41 = vsub.f32 1.0, %v248_v31  ;;  %v893_v42 = vpop.eup %613  ;;  %v898_v47 = vadd.f32 1.0, %v612_v32  ;;  %v235_v60 = vmul.f32 %v861_v61, %v234_v37  ;;  %v206_v27 = vadd.f32 %v848_v53, %v205_v48  ;;  %vm979_vm2 = vmor %vm267_vm13, %vm268_vm14 }
  0x43   :  { %v264_v46 = vsub.f32 1.0, %v263_v33  ;;  %v278_v59 = vmul.f32 %v893_v42, %v845_v50  ;;  %v221_v30 = vadd.f32 %v853_v57, %v220_v51  ;;  %v286_v51 = vand.u32 2147483647, %v845_v50 }
  0x44   :  { %v250_v1 = vmul.f32 %v875_v5, %v249_v41  ;;  %v236_v33 = vadd.f32 %v861_v61, %v235_v60  ;;  %617 = vrcp.f32 %v898_v47  ;;  %v244_v41 = vor.u32 1.1754944e-38, %v243_v56 }
  0x45   :  { %v265_v24 = vmul.f32 %v881_v26, %v264_v46  ;;  %v279_v31 = vsub.f32 1.0, %v278_v59  ;;  %v210_v59 = vsel %vm929_vm10, %v848_v53, %v206_v27  ;;  %v225_v40 = vsel %vm937_vm12, %v853_v57, %v221_v30 }
  0x46   :  { %v251_v37 = vadd.f32 %v875_v5, %v250_v1  ;;  %v288_v1 = vand.u32 2147483648, %v845_v50  ;;  %vm985_vm5 = vcmp.eq.f32.partialorder %v271_v29, 8.507059e+37  ;;  %vm282_vm6 = vweird.f32 %v845_v50 }
  0x47   :  { %v266_v38 = vadd.f32 %v881_v26, %v265_v24  ;;  %v280_v60 = vmul.f32 %v893_v42, %v279_v31  ;;  %v303_v53 = vand.u32 2147483648, %v895_v43  ;;  %v240_v44 = vsel %vm950_vm15, %v861_v61, %v236_v33  ;;  %v998_v22 = vpop.eup %615 }
  0x48   :  { %v255_v57 = vsel %vm959_vm0, %v875_v5, %v251_v37  ;;  %v274_v27 = vor.u32 1.1754944e-38, %v273_v39  ;;  %vm283_vm7 = vweird.f32 %v893_v42  ;;  %v1002_v28 = vsel %vm901_vm3, %v214_v45, %v210_v59 }
  0x49   :  { %v1006_v30 = vsel %vm906_vm4, %v229_v54, %v225_v40  ;;  %v270_v61 = vsel %vm979_vm2, %v881_v26, %v266_v38  ;;  %vm1011_vm9 = vcmp.eq.f32.partialorder %v286_v51, 8.507059e+37  ;;  %v281_v32 = vadd.f32 %v893_v42, %v280_v60  ;;  %vm1031_vm3 = vmor %vm282_vm6, %vm283_vm7 }
  0x4a   :  { %v1015_v5 = vpop.eup %617  ;;  %v289_v29 = vor.u32 1.1754944e-38, %v288_v1  ;;  %v301_v45 = vand.u32 2147483647, %v895_v43  ;;  %v1023_v52 = vsel %vm917_vm8, %v244_v41, %v240_v44  ;;  %v1027_v26 = vsel %vm963_vm1, %v259_v13, %v255_v57 }
  0x4b   :  { %v1035_v33 = vor.u32 1.1754944e-38, %v303_v53  ;;  %v371_v34 = vmax.f32 %v797_v21, %v799_v23  ;;  %v1041_v0 = vsel %vm985_vm5, %v274_v27, %v270_v61  ;;  %v293_v37 = vmul.f32 %v998_v22, %v895_v43 }
  0x4c   :  { %v378_v39 = vadd.f32 %v773_v8, %v769_v6  ;;  %v385_v50 = vadd.f32 %v775_v9, %v771_v7  ;;  %v308_v41 = vmul.f32 %v1015_v5, %v898_v47  ;;  %v316_v46 = vand.u32 2147483647, %v898_v47 }
  0x4d   :  { %v318_v48 = vand.u32 2147483648, %v898_v47  ;;  %v1056_v38 = vmax.f32 %v855_v58, %v327_v25  ;;  %v285_v51 = vsel %vm1031_vm3, %v893_v42, %v281_v32  ;;  %v334_v6 = vrot.slane %v870_v2, 1 }
  0x4e   :  { %v365_v8 = vrot.slane %v364_v49, 4  ;;  %v392_v7 = vadd.f32 %v779_v11, %v777_v10  ;;  %vm297_vm4 = vweird.f32 %v895_v43  ;;  %vm298_vm8 = vweird.f32 %v998_v22 }
  0x4f   :  { %v372_v9 = vrot.slane %v371_v34, 4  ;;  %v379_v59 = vrot.slane %v378_v39, 4  ;;  %v386_v40 = vrot.slane %v385_v50, 4  ;;  %v399_v58 = vadd.f32 %v783_v14, %v781_v12  ;;  %vm1117_vm14 = vmor %vm297_vm4, %vm298_vm8 }
  0x50   :  { %v294_v25 = vsub.f32 1.0, %v293_v37  ;;  %vm312_vm10 = vweird.f32 %v898_v47  ;;  %v340_v42 = vmax.f32 %v851_v55, %v339_v3  ;;  %v1075_v10 = vmax.f32 %v864_v62, %v346_v35 }
  0x51   :  { %v393_v11 = vrot.slane %v392_v7, 4  ;;  %v309_v56 = vsub.f32 1.0, %v308_v41  ;;  %v1077_v60 = vor.u32 1.1754944e-38, %v318_v48  ;;  %v400_v1 = vrot.slane %v399_v58, 4 }
  0x52   :  { %v406_v12 = vadd.f32 %v787_v16, %v785_v15  ;;  %v1083_v14 = vsel %vm1011_vm9, %v289_v29, %v285_v51  ;;  %v1086_v13 = vmax.f32 %v870_v2, %v334_v6  ;;  %v354_v55 = vmax.f32 %v866_v63, %v353_v36 }
  0x53   :  { %v366_v62 = vmax.f32 %v364_v49, %v365_v8  ;;  %v373_v3 = vmax.f32 %v371_v34, %v372_v9  ;;  %v380_v35 = vadd.f32 %v379_v59, %v378_v39  ;;  %v387_v24 = vadd.f32 %v386_v40, %v385_v50 }
  0x54   :  { %v407_v53 = vrot.slane %v406_v12, 4  ;;  %v295_v44 = vmul.f32 %v998_v22, %v294_v25  ;;  %v341_v57 = vrot.slane %v340_v42, 1  ;;  %v394_v15 = vadd.f32 %v393_v11, %v392_v7 }
  0x55   :  { %v413_v16 = vadd.f32 %v791_v18, %v789_v17  ;;  %v310_v27 = vmul.f32 %v1015_v5, %v309_v56  ;;  %v348_v2 = vrot.slane %v1075_v10, 1  ;;  %v360_v61 = vrot.slane %v873_v4, 2 }
  0x56   :  { %v401_v31 = vadd.f32 %v400_v1, %v399_v58  ;;  %vm313_vm11 = vweird.f32 %v1015_v5  ;;  %v367_v63 = vrot.slane %v366_v62, 2  ;;  %v408_v36 = vadd.f32 %v407_v53, %v406_v12 }
  0x57   :  { %v414_v32 = vrot.slane %v413_v16, 4  ;;  %vm1098_vm12 = vcmp.eq.f32.partialorder %v301_v45, 8.507059e+37  ;;  %vm1102_vm13 = vcmp.eq.f32.partialorder %v316_v46, 8.507059e+37  ;;  %v355_v17 = vrot.slane %v354_v55, 1  ;;  %vm1125_vm15 = vmor %vm312_vm10, %vm313_vm11 }
  0x58   :  { %v374_v18 = vrot.slane %v373_v3, 2  ;;  %v381_v54 = vrot.slane %v380_v35, 2  ;;  %v388_v34 = vrot.slane %v387_v24, 2  ;;  %v296_v37 = vadd.f32 %v998_v22, %v295_v44 }
  0x59   :  { %v395_v39 = vrot.slane %v394_v15, 2  ;;  %v415_v50 = vadd.f32 %v414_v32, %v413_v16  ;;  %v420_v41 = vadd.f32 %v795_v20, %v793_v19  ;;  %v311_v45 = vadd.f32 %v1015_v5, %v310_v27 }
  0x5a   :  { %v361_v48 = vmax.f32 %v873_v4, %v360_v61  ;;  %v402_v51 = vrot.slane %v401_v31, 2  ;;  %v427_v46 = vadd.f32 %v799_v23, %v797_v21  ;;  %v368_v8 = vmax.f32 %v366_v62, %v367_v63 }
  0x5b   :  { %v409_v7 = vrot.slane %v408_v36, 2  ;;  %v421_v9 = vrot.slane %v420_v41, 4  ;;  %v375_v20 = vmax.f32 %v373_v3, %v374_v18  ;;  %v382_v21 = vadd.f32 %v381_v54, %v380_v35 }
  0x5c   :  { %v389_v23 = vadd.f32 %v388_v34, %v387_v24  ;;  %v428_v4 = vrot.slane %v427_v46, 4  ;;  %v396_v43 = vadd.f32 %v395_v39, %v394_v15  ;;  %v416_v59 = vrot.slane %v415_v50, 2 }
  0x5d   :  { %v422_v40 = vadd.f32 %v421_v9, %v420_v41  ;;  %v728_v58 = vmov 16.0   ;;  %v300_v25 = vsel %vm1117_vm14, %v998_v22, %v296_v37  ;;  %v342_v11 = vmax.f32 %v340_v42, %v341_v57 }
  0x5e   :  { %619 = vrcp.f32 %v728_v58  ;;  %v403_v56 = vadd.f32 %v402_v51, %v401_v31  ;;  %v429_v47 = vadd.f32 %v428_v4, %v427_v46  ;;  %v315_v1 = vsel %vm1125_vm15, %v1015_v5, %v311_v45 }
  0x5f   :  { %v362_v12 = vrot.slane %v361_v48, 1  ;;  %v410_v62 = vadd.f32 %v409_v7, %v408_v36  ;;  %v423_v3 = vrot.slane %v422_v40, 2  ;;  %v369_v35 = vrot.slane %v368_v8, 1 }
  0x60   :  { %v376_v24 = vrot.slane %v375_v20, 1  ;;  %v383_v53 = vrot.slane %v382_v21, 1  ;;  %v430_v44 = vrot.slane %v429_v47, 2  ;;  %v349_v15 = vmax.f32 %v1075_v10, %v348_v2 }
  0x61   :  { %v390_v16 = vrot.slane %v389_v23, 1  ;;  %v397_v27 = vrot.slane %v396_v43, 1  ;;  %v417_v61 = vadd.f32 %v416_v59, %v415_v50  ;;  %v356_v22 = vmax.f32 %v354_v55, %v355_v17 }
  0x62   :  { %v404_v42 = vrot.slane %v403_v56, 1  ;;  %v424_v57 = vadd.f32 %v423_v3, %v422_v40  ;;  %v431_v31 = vadd.f32 %v430_v44, %v429_v47  ;;  %v305_v5 = vsel %vm1098_vm12, %v1035_v33, %v300_v25 }
  0x63   :  { %v320_v36 = vsel %vm1102_vm13, %v1077_v60, %v315_v1  ;;  %v363_v32 = vmax.f32 %v361_v48, %v362_v12  ;;  %v411_v18 = vrot.slane %v410_v62, 1  ;;  %v370_v54 = vmax.f32 %v368_v8, %v369_v35 }
  0x64   :  { %v620_v63 = vpop.eup %619  ;;  %v377_v10 = vmax.f32 %v375_v20, %v376_v24  ;;  %v384_v2 = vadd.f32 %v383_v53, %v382_v21  ;;  %v391_v37 = vadd.f32 %v390_v16, %v389_v23  ;;  %v398_v55 = vadd.f32 %v397_v27, %v396_v43 }
  0x65   :  { %v435_v34 = vmul.f32 16.0, %v620_v63  ;;  %v418_v17 = vrot.slane %v417_v61, 1  ;;  %v449_v39 = vmul.f32 %v1056_v38, %v1002_v28  ;;  %v405_v50 = vadd.f32 %v404_v42, %v403_v56 }
  0x66   :  { %v425_v41 = vrot.slane %v424_v57, 1  ;;  %v432_v29 = vrot.slane %v431_v31, 1  ;;  %v412_v45 = vadd.f32 %v411_v18, %v410_v62  ;;  %v450_v60 = vmul.f32 %v1086_v13, %v1006_v30 }
  0x67   :  { %v436_v33 = vsub.f32 1.0, %v435_v34  ;;  %v451_v49 = vmul.f32 %v342_v11, %v1023_v52  ;;  %v452_v48 = vmul.f32 %v349_v15, %v1027_v26  ;;  %v453_v46 = vmul.f32 %v356_v22, %v1041_v0 }
  0x68   :  { %v454_v6 = vmul.f32 %v363_v32, %v1083_v14  ;;  %v455_v8 = vmul.f32 %v370_v54, %v305_v5  ;;  %v419_v7 = vadd.f32 %v418_v17, %v417_v61  ;;  %vm439_vm0 = vweird.f32 %v620_v63 }
  0x69   :  { %v437_v51 = vmul.f32 %v620_v63, %v436_v33  ;;  %v456_v38 = vmul.f32 %v377_v10, %v320_v36  ;;  %v457_v9 = vsub.f32 1.0, %v1002_v28  ;;  %v426_v19 = vadd.f32 %v425_v41, %v424_v57 }
  0x6a   :  { %v433_v20 = vadd.f32 %v432_v29, %v431_v31  ;;  %v458_v13 = vsub.f32 1.0, %v1006_v30  ;;  %v459_v23 = vsub.f32 1.0, %v1023_v52  ;;  %v460_v4 = vsub.f32 1.0, %v1027_v26 }
  0x6b   :  { %v438_v21 = vadd.f32 %v620_v63, %v437_v51  ;;  %v461_v43 = vsub.f32 1.0, %v1041_v0  ;;  %v462_v59 = vsub.f32 1.0, %v1083_v14  ;;  %v463_v58 = vsub.f32 1.0, %v305_v5 }
  0x6c   :  { %v464_v25 = vsub.f32 1.0, %v320_v36  ;;  %vm510_vm1 = vcmask 1041409   ;;  %vm513_vm2 = vcmask 1042434   ;;  %vm516_vm5 = vcmask 1043459  }
  0x6d   :  { %v440_v40 = vsel %vm439_vm0, %v620_v63, %v438_v21  ;;  %vm519_vm6 = vcmask 1044484   ;;  %vm522_vm7 = vcmask 1045509   ;;  %vm525_vm9 = vcmask 1046534  }
  0x6e   :  { %v441_v11 = vmul.f32 %v440_v40, %v384_v2  ;;  %v442_v56 = vmul.f32 %v440_v40, %v391_v37  ;;  %v443_v28 = vmul.f32 %v440_v40, %v398_v55  ;;  %v444_v47 = vmul.f32 %v440_v40, %v405_v50  ;;  %v586_v50 = vld [vmem:[%s1167_s4] ss:$0 sm:$0xff] }
  0x6f   :  { %v445_v1 = vmul.f32 %v440_v40, %v412_v45  ;;  %v446_v12 = vmul.f32 %v440_v40, %v419_v7  ;;  %v447_v62 = vmul.f32 %v440_v40, %v426_v19  ;;  %v448_v30 = vmul.f32 %v440_v40, %v433_v20 }
  0x70   :  { %v465_v3 = vmul.f32 %v457_v9, %v441_v11  ;;  %v466_v52 = vmul.f32 %v458_v13, %v442_v56  ;;  %v467_v35 = vmul.f32 %v459_v23, %v443_v28  ;;  %v468_v26 = vmul.f32 %v460_v4, %v444_v47 }
  0x71   :  { %v469_v24 = vmul.f32 %v461_v43, %v445_v1  ;;  %v470_v0 = vmul.f32 %v462_v59, %v446_v12  ;;  %v471_v53 = vmul.f32 %v463_v58, %v447_v62  ;;  %v472_v14 = vmul.f32 %v464_v25, %v448_v30 }
  0x72   :  { %v473_v44 = vadd.f32 %v465_v3, %v449_v39  ;;  %v474_v15 = vadd.f32 %v466_v52, %v450_v60  ;;  %v475_v16 = vadd.f32 %v467_v35, %v451_v49  ;;  %v476_v27 = vadd.f32 %v468_v26, %v452_v48 }
  0x73   :  { %v477_v61 = vadd.f32 %v469_v24, %v453_v46  ;;  %v478_v22 = vadd.f32 %v470_v0, %v454_v6  ;;  %v479_v42 = vadd.f32 %v471_v53, %v455_v8  ;;  %v480_v57 = vadd.f32 %v472_v14, %v456_v38 }
  0x74   :  { %v509_v31 = vrot.slane %v474_v15, 7  ;;  %v512_v63 = vrot.slane %v475_v16, 6  ;;  %v515_v5 = vrot.slane %v476_v27, 5  ;;  %vm528_vm3 = vcmask 1047559  }
  0x75   :  { %v518_v36 = vrot.slane %v477_v61, 4  ;;  %v521_v18 = vrot.slane %v478_v22, 3  ;;  %v524_v10 = vrot.slane %v479_v42, 2  ;;  %v527_v34 = vrot.slane %v480_v57, 1 }
  0x76   :  { %v511_v32 = vsel %vm510_vm1, %v509_v31, %v473_v44 }
  0x77   :  { %v514_v54 = vsel %vm513_vm2, %v512_v63, %v511_v32 }
  0x78   :  { %v517_v2 = vsel %vm516_vm5, %v515_v5, %v514_v54 }
  0x79   :  { %v520_v37 = vsel %vm519_vm6, %v518_v36, %v517_v2 }
  0x7a   :  { %v523_v55 = vsel %vm522_vm7, %v521_v18, %v520_v37 }
  0x7b   :  { %v526_v17 = vsel %vm525_vm9, %v524_v10, %v523_v55 }
  0x7c   :  { %v529_v39 = vsel %vm528_vm3, %v527_v34, %v526_v17 }
  0x7d   :  { %547 = vmatmul.f32.vlgmr.msra.gmra.mxu0 %v529_v39 }
  0xfa   :  { %v548_v41 = vpop.f32.mrf.mxu0 }
  0xfb   :  { %v549_v29 = vadd.f32 %v586_v50, %v548_v41 }
  0xfd   :  { %551 = vst [vmem:[#allocation8] sm:$0xff] %v549_v29 }
  0xfe   :  { %562 = dma.vmem_to_hbm [thread:$0]  %s558_s11, 128, %s560_s14, [#allocation4]  }
  0xff   :  { %721 = dma.done.wait [#allocation4], 128  }
 0x100   :  { %722 = vsyncadd [#allocation4], 4294967168 }
 0x101   :  { %567 = vsyncpa [#allocation3], 1 }
 0x102   :  { %568 = vsyncpa [#allocation6], 1 }
 0x103   :  { %569 = vsyncpa [#allocation4], 1 }

</bundles_post_ra>
